<compile_context>
chip_gen: v5e
topology: v5e:2x2
jax: 0.10.0
libtpu: 0.0.40
codegen_flags: <defaults>
</compile_context>

<pallas_src>
import functools

import jax
import jax.numpy as jnp
from jax import lax
from jax.experimental import pallas as pl
from jax.experimental.pallas import tpu as pltpu

_PAD = 128  # lane-aligned zero halo around the flat H*W axis (must be >= W + 1)


def _triplet_unit_kernel(x_ref, dww_ref, pw_ref, b_ref, mask_ref, out_ref, *, H, W):
    # x_ref:    (1, Cin, HW)   channels-first, flat spatial (lane-dense)
    # dww_ref:  (Cin, 9)       depthwise taps, row-major (oh, ow)
    # pw_ref:   (Cout, Cin)    pointwise weight with BN scale folded in
    # b_ref:    (Cout, 1)      fully folded bias (dw bias + pw bias + BN shift)
    # mask_ref: (2, HW)        column masks: row0 = (w >= 1), row1 = (w <= W-2)
    # out_ref:  (1, Cout, HW)
    HW = H * W
    Cin = x_ref.shape[1]

    # ReLU, then embed in a lane-aligned zero halo so vertical (H) out-of-range taps read 0.
    xr = jnp.maximum(x_ref[0], 0.0)                                  # (Cin, HW)
    zpad = jnp.zeros((Cin, _PAD), jnp.float32)
    xz = jnp.concatenate([zpad, xr, zpad], axis=1)                   # (Cin, 2*_PAD + HW)

    # Depthwise 3x3: 9 shifted MACs on the flat H*W axis, grouped by horizontal offset so the
    # W-edge mask is applied once per group.
    acc = None
    for ow in (-1, 0, 1):
        grp = None
        for oh in (-1, 0, 1):
            t = (oh + 1) * 3 + (ow + 1)                              # tap index, row-major
            off = oh * W + ow                                        # flat spatial offset
            sh = xz[:, _PAD + off:_PAD + off + HW]                   # (Cin, HW) shifted window
            term = sh * dww_ref[:, t:t + 1]                          # per-channel tap weight
            grp = term if grp is None else grp + term
        if ow == -1:
            grp = grp * mask_ref[0:1, :]
        elif ow == 1:
            grp = grp * mask_ref[1:2, :]
        acc = grp if acc is None else acc + grp                      # (Cin, HW)

    # Pointwise 1x1 conv + folded BatchNorm: (Cout, Cin) @ (Cin, HW) on the MXU.
    y = jnp.dot(pw_ref[...], acc, preferred_element_type=jnp.float32) + b_ref[...]
    out_ref[0] = y                                                   # lane-dense store


def triplet_unit_forward(x_nchw, params, *, eps=1e-5):
    """Triplet_unit forward (stride=1).  x_nchw: (B, Cin, H, W) -> (B, Cout, H, W)."""
    B, Cin, H, W = x_nchw.shape
    Cout = params["pw_w"].shape[0]
    HW = H * W
    assert W + 1 <= _PAD, "spatial width too large for the fixed lane halo"

    # ---- fold BN (eval-mode) + depthwise bias + pointwise bias into the pointwise op ----
    scale = params["bn_gamma"] * lax.rsqrt(params["bn_var"] + eps)               # (Cout,)
    pw_w = params["pw_w"].reshape(Cout, Cin).astype(jnp.float32)
    pw_folded = pw_w * scale[:, None]                                             # (Cout, Cin)
    bias_folded = (scale * (pw_w @ params["dw_b"] + params["pw_b"])
                   + params["bn_beta"] - params["bn_mean"] * scale)               # (Cout,)
    dww = params["dw_w"].reshape(Cin, 9).astype(jnp.float32)                      # (Cin, 9)

    # column-validity masks for the ow = -1 / +1 taps (zero padding at the W edges)
    w_idx = jnp.tile(jnp.arange(W, dtype=jnp.int32), H)                           # (HW,)
    wmask = jnp.stack([(w_idx >= 1), (w_idx <= W - 2)]).astype(jnp.float32)       # (2, HW)

    kernel = functools.partial(_triplet_unit_kernel, H=H, W=W)
    out = pl.pallas_call(
        kernel,
        out_shape=jax.ShapeDtypeStruct((B, Cout, HW), jnp.float32),
        grid=(B,),
        in_specs=[
            pl.BlockSpec((1, Cin, HW), lambda b: (b, 0, 0)),     # activation block
            pl.BlockSpec((Cin, 9), lambda b: (0, 0)),            # depthwise taps
            pl.BlockSpec((Cout, Cin), lambda b: (0, 0)),         # folded pointwise weight
            pl.BlockSpec((Cout, 1), lambda b: (0, 0)),           # folded bias
            pl.BlockSpec((2, HW), lambda b: (0, 0)),             # column masks
        ],
        out_specs=pl.BlockSpec((1, Cout, HW), lambda b: (b, 0, 0)),
        compiler_params=pltpu.CompilerParams(
            dimension_semantics=("parallel",)),                  # v7x: shard batch over 2 TCs
    )(x_nchw.reshape(B, Cin, HW).astype(jnp.float32),
      dww, pw_folded, bias_folded.reshape(Cout, 1), wmask)

    return out.reshape(B, Cout, H, W)


def init_params(key, cin, cout):
    ks = jax.random.split(key, 7)
    return {
        # depthwise conv: PyTorch (Cin, 1, 3, 3) -> stored (Cin, 3, 3); bias (Cin,)
        "dw_w": 0.1 * jax.random.normal(ks[0], (cin, 3, 3), jnp.float32),
        "dw_b": 0.1 * jax.random.normal(ks[1], (cin,), jnp.float32),
        # pointwise conv: PyTorch (Cout, Cin, 1, 1) -> stored (Cout, Cin); bias (Cout,)
        "pw_w": 0.1 * jax.random.normal(ks[2], (cout, cin), jnp.float32),
        "pw_b": 0.1 * jax.random.normal(ks[3], (cout,), jnp.float32),
        # BatchNorm2d affine params + deterministic running stats (eval-mode semantics)
        "bn_gamma": 1.0 + 0.1 * jax.random.normal(ks[4], (cout,), jnp.float32),
        "bn_beta": 0.1 * jax.random.normal(ks[5], (cout,), jnp.float32),
        "bn_mean": 0.1 * jax.random.normal(ks[6], (cout,), jnp.float32),
        "bn_var": jnp.ones((cout,), jnp.float32),
    }


def _reference(x, params, eps=1e-5):
    """Pure-JAX reference of Triplet_unit.forward (eval-mode BN)."""
    B, Cin, H, W = x.shape
    Cout = params["pw_w"].shape[0]
    xr = jnp.maximum(x, 0.0)
    xp = jnp.pad(xr, ((0, 0), (0, 0), (1, 1), (1, 1)))
    acc = jnp.zeros((B, Cin, H, W), jnp.float32)
    for dh in range(3):
        for dv in range(3):
            acc = acc + xp[:, :, dh:dh + H, dv:dv + W] * params["dw_w"][None, :, dh, dv, None, None]
    acc = acc + params["dw_b"][None, :, None, None]
    y = jnp.einsum("oc,bchw->bohw", params["pw_w"].reshape(Cout, Cin), acc,
                   precision=lax.Precision.HIGHEST) + params["pw_b"][None, :, None, None]
    scale = params["bn_gamma"] / jnp.sqrt(params["bn_var"] + eps)
    shift = params["bn_beta"] - params["bn_mean"] * scale
    return y * scale[None, :, None, None] + shift[None, :, None, None]


if __name__ == "__main__":
    B, C, H, W = 2, 32, 16, 16      # inplanes = outplanes = 32, stride = 1

    key = jax.random.PRNGKey(0)
    kx, kp = jax.random.split(key)
    x = jax.random.normal(kx, (B, C, H, W), jnp.float32)
    params = init_params(kp, C, C)

    out = triplet_unit_forward(x, params)
    jax.block_until_ready(out)
    assert out.shape == (B, C, H, W)

    ref = _reference(x, params)
    err = float(jnp.max(jnp.abs(out - ref)))
    assert err < 3e-2, f"mismatch vs reference: max abs err = {err}"

    print("KERNEL_OK")
</pallas_src>

<mosaic_0001>
module attributes {stable_mosaic.version = 11 : i64} {
  func.func @_triplet_unit_kernel(%arg0: i32, %arg1: memref<1x32x256xf32, #tpu.memory_space<vmem>>, %arg2: memref<32x9xf32, #tpu.memory_space<vmem>>, %arg3: memref<32x32xf32, #tpu.memory_space<vmem>>, %arg4: memref<32x1xf32, #tpu.memory_space<vmem>>, %arg5: memref<2x256xf32, #tpu.memory_space<vmem>>, %arg6: memref<1x32x256xf32, #tpu.memory_space<vmem>>) attributes {dimension_semantics = [#tpu.dimension_semantics<parallel>], iteration_bounds = array<i64: 2>, scalar_prefetch = 0 : i64, scratch_operands = 0 : i64, tpu.core_type = #tpu.core_type<tc>, window_params = [{transform_indices = @transform_0, window_bounds = array<i64: 1, 32, 256>}, {pipeline_mode = #tpu.pipeline_mode<synchronous>, transform_indices = @transform_1, window_bounds = array<i64: 32, 9>}, {pipeline_mode = #tpu.pipeline_mode<synchronous>, transform_indices = @transform_2, window_bounds = array<i64: 32, 32>}, {pipeline_mode = #tpu.pipeline_mode<synchronous>, transform_indices = @transform_3, window_bounds = array<i64: 32, 1>}, {pipeline_mode = #tpu.pipeline_mode<synchronous>, transform_indices = @transform_4, window_bounds = array<i64: 2, 256>}, {transform_indices = @transform_5, window_bounds = array<i64: 1, 32, 256>}]} {
    %c0 = arith.constant 0 : index
    %c0_0 = arith.constant 0 : index
    %c0_1 = arith.constant 0 : index
    %0 = vector.load %arg1[%c0, %c0_0, %c0_1] : memref<1x32x256xf32, #tpu.memory_space<vmem>>, vector<1x32x256xf32>
    %1 = vector.shape_cast %0 : vector<1x32x256xf32> to vector<32x256xf32>
    %cst = arith.constant 0.000000e+00 : f32
    %2 = vector.broadcast %cst : f32 to vector<32x256xf32>
    %3 = arith.maximumf %1, %2 : vector<32x256xf32>
    %cst_2 = arith.constant 0.000000e+00 : f32
    %4 = vector.broadcast %cst_2 : f32 to vector<32x128xf32>
    %5 = tpu.concatenate %4, %3, %4 in 1 : vector<32x128xf32>, vector<32x256xf32>, vector<32x128xf32> -> vector<32x512xf32>
    %6 = vector.extract_strided_slice %5 {offsets = [0, 111], sizes = [32, 256], strides = [1, 1]} : vector<32x512xf32> to vector<32x256xf32>
    %c0_3 = arith.constant 0 : index
    %c0_4 = arith.constant 0 : index
    %7 = vector.load %arg2[%c0_3, %c0_4] : memref<32x9xf32, #tpu.memory_space<vmem>>, vector<32x1xf32>
    %8 = vector.broadcast %7 : vector<32x1xf32> to vector<32x256xf32>
    %9 = arith.mulf %6, %8 : vector<32x256xf32>
    %10 = vector.extract_strided_slice %5 {offsets = [0, 127], sizes = [32, 256], strides = [1, 1]} : vector<32x512xf32> to vector<32x256xf32>
    %c0_5 = arith.constant 0 : index
    %c3 = arith.constant 3 : index
    %11 = vector.load %arg2[%c0_5, %c3] : memref<32x9xf32, #tpu.memory_space<vmem>>, vector<32x1xf32>
    %12 = vector.broadcast %11 : vector<32x1xf32> to vector<32x256xf32>
    %13 = arith.mulf %10, %12 : vector<32x256xf32>
    %14 = arith.addf %9, %13 : vector<32x256xf32>
    %15 = vector.extract_strided_slice %5 {offsets = [0, 143], sizes = [32, 256], strides = [1, 1]} : vector<32x512xf32> to vector<32x256xf32>
    %c0_6 = arith.constant 0 : index
    %c6 = arith.constant 6 : index
    %16 = vector.load %arg2[%c0_6, %c6] : memref<32x9xf32, #tpu.memory_space<vmem>>, vector<32x1xf32>
    %17 = vector.broadcast %16 : vector<32x1xf32> to vector<32x256xf32>
    %18 = arith.mulf %15, %17 : vector<32x256xf32>
    %19 = arith.addf %14, %18 : vector<32x256xf32>
    %c0_7 = arith.constant 0 : index
    %c0_8 = arith.constant 0 : index
    %20 = vector.load %arg5[%c0_7, %c0_8] : memref<2x256xf32, #tpu.memory_space<vmem>>, vector<1x256xf32>
    %21 = vector.broadcast %20 : vector<1x256xf32> to vector<32x256xf32>
    %22 = arith.mulf %19, %21 : vector<32x256xf32>
    %23 = vector.extract_strided_slice %5 {offsets = [0, 112], sizes = [32, 256], strides = [1, 1]} : vector<32x512xf32> to vector<32x256xf32>
    %c0_9 = arith.constant 0 : index
    %c1 = arith.constant 1 : index
    %24 = vector.load %arg2[%c0_9, %c1] : memref<32x9xf32, #tpu.memory_space<vmem>>, vector<32x1xf32>
    %25 = vector.broadcast %24 : vector<32x1xf32> to vector<32x256xf32>
    %26 = arith.mulf %23, %25 : vector<32x256xf32>
    %27 = vector.extract_strided_slice %5 {offsets = [0, 128], sizes = [32, 256], strides = [1, 1]} : vector<32x512xf32> to vector<32x256xf32>
    %c0_10 = arith.constant 0 : index
    %c4 = arith.constant 4 : index
    %28 = vector.load %arg2[%c0_10, %c4] : memref<32x9xf32, #tpu.memory_space<vmem>>, vector<32x1xf32>
    %29 = vector.broadcast %28 : vector<32x1xf32> to vector<32x256xf32>
    %30 = arith.mulf %27, %29 : vector<32x256xf32>
    %31 = arith.addf %26, %30 : vector<32x256xf32>
    %32 = vector.extract_strided_slice %5 {offsets = [0, 144], sizes = [32, 256], strides = [1, 1]} : vector<32x512xf32> to vector<32x256xf32>
    %c0_11 = arith.constant 0 : index
    %c7 = arith.constant 7 : index
    %33 = vector.load %arg2[%c0_11, %c7] : memref<32x9xf32, #tpu.memory_space<vmem>>, vector<32x1xf32>
    %34 = vector.broadcast %33 : vector<32x1xf32> to vector<32x256xf32>
    %35 = arith.mulf %32, %34 : vector<32x256xf32>
    %36 = arith.addf %31, %35 : vector<32x256xf32>
    %37 = arith.addf %22, %36 : vector<32x256xf32>
    %38 = vector.extract_strided_slice %5 {offsets = [0, 113], sizes = [32, 256], strides = [1, 1]} : vector<32x512xf32> to vector<32x256xf32>
    %c0_12 = arith.constant 0 : index
    %c2 = arith.constant 2 : index
    %39 = vector.load %arg2[%c0_12, %c2] : memref<32x9xf32, #tpu.memory_space<vmem>>, vector<32x1xf32>
    %40 = vector.broadcast %39 : vector<32x1xf32> to vector<32x256xf32>
    %41 = arith.mulf %38, %40 : vector<32x256xf32>
    %42 = vector.extract_strided_slice %5 {offsets = [0, 129], sizes = [32, 256], strides = [1, 1]} : vector<32x512xf32> to vector<32x256xf32>
    %c0_13 = arith.constant 0 : index
    %c5 = arith.constant 5 : index
    %43 = vector.load %arg2[%c0_13, %c5] : memref<32x9xf32, #tpu.memory_space<vmem>>, vector<32x1xf32>
    %44 = vector.broadcast %43 : vector<32x1xf32> to vector<32x256xf32>
    %45 = arith.mulf %42, %44 : vector<32x256xf32>
    %46 = arith.addf %41, %45 : vector<32x256xf32>
    %47 = vector.extract_strided_slice %5 {offsets = [0, 145], sizes = [32, 256], strides = [1, 1]} : vector<32x512xf32> to vector<32x256xf32>
    %c0_14 = arith.constant 0 : index
    %c8 = arith.constant 8 : index
    %48 = vector.load %arg2[%c0_14, %c8] : memref<32x9xf32, #tpu.memory_space<vmem>>, vector<32x1xf32>
    %49 = vector.broadcast %48 : vector<32x1xf32> to vector<32x256xf32>
    %50 = arith.mulf %47, %49 : vector<32x256xf32>
    %51 = arith.addf %46, %50 : vector<32x256xf32>
    %c1_15 = arith.constant 1 : index
    %c0_16 = arith.constant 0 : index
    %52 = vector.load %arg5[%c1_15, %c0_16] : memref<2x256xf32, #tpu.memory_space<vmem>>, vector<1x256xf32>
    %53 = vector.broadcast %52 : vector<1x256xf32> to vector<32x256xf32>
    %54 = arith.mulf %51, %53 : vector<32x256xf32>
    %55 = arith.addf %37, %54 : vector<32x256xf32>
    %c0_17 = arith.constant 0 : index
    %c0_18 = arith.constant 0 : index
    %56 = vector.load %arg3[%c0_17, %c0_18] : memref<32x32xf32, #tpu.memory_space<vmem>>, vector<32x32xf32>
    %cst_19 = arith.constant dense<0.000000e+00> : vector<32x256xf32>
    %57 = tpu.matmul %56, %55, %cst_19 {dimension_numbers = #tpu.dot_dimension_numbers<[1], [0], [0], [1], [0, 0, 1, 1], [], []>} : vector<32x32xf32>, vector<32x256xf32>, vector<32x256xf32> -> vector<32x256xf32>
    %c0_20 = arith.constant 0 : index
    %c0_21 = arith.constant 0 : index
    %58 = vector.load %arg4[%c0_20, %c0_21] : memref<32x1xf32, #tpu.memory_space<vmem>>, vector<32x1xf32>
    %59 = vector.broadcast %58 : vector<32x1xf32> to vector<32x256xf32>
    %60 = arith.addf %57, %59 : vector<32x256xf32>
    %c0_22 = arith.constant 0 : index
    %c0_23 = arith.constant 0 : index
    %c0_24 = arith.constant 0 : index
    %61 = vector.load %arg6[%c0_22, %c0_23, %c0_24] : memref<1x32x256xf32, #tpu.memory_space<vmem>>, vector<1x32x256xf32>
    %62 = vector.shape_cast %61 : vector<1x32x256xf32> to vector<32x256xf32>
    %63 = vector.shape_cast %60 : vector<32x256xf32> to vector<1x32x256xf32>
    tpu.vector_store %arg6[%c0_22, %c0_23, %c0_24], %63 {strides = array<i32>} : memref<1x32x256xf32, #tpu.memory_space<vmem>>, vector<1x32x256xf32>,
    return
  }
  func.func @transform_0(%arg0: i32) -> (i32, i32, i32) {
    %c0_i32 = arith.constant 0 : i32
    %c0_i32_0 = arith.constant 0 : i32
    %c0_i32_1 = arith.constant 0 : i32
    return %arg0, %c0_i32, %c0_i32_0 : i32, i32, i32
  }
  func.func @transform_1(%arg0: i32) -> (i32, i32) {
    %c0_i32 = arith.constant 0 : i32
    %c0_i32_0 = arith.constant 0 : i32
    %c0_i32_1 = arith.constant 0 : i32
    return %c0_i32, %c0_i32_0 : i32, i32
  }
  func.func @transform_2(%arg0: i32) -> (i32, i32) {
    %c0_i32 = arith.constant 0 : i32
    %c0_i32_0 = arith.constant 0 : i32
    %c0_i32_1 = arith.constant 0 : i32
    return %c0_i32, %c0_i32_0 : i32, i32
  }
  func.func @transform_3(%arg0: i32) -> (i32, i32) {
    %c0_i32 = arith.constant 0 : i32
    %c0_i32_0 = arith.constant 0 : i32
    %c0_i32_1 = arith.constant 0 : i32
    return %c0_i32, %c0_i32_0 : i32, i32
  }
  func.func @transform_4(%arg0: i32) -> (i32, i32) {
    %c0_i32 = arith.constant 0 : i32
    %c0_i32_0 = arith.constant 0 : i32
    %c0_i32_1 = arith.constant 0 : i32
    return %c0_i32, %c0_i32_0 : i32, i32
  }
  func.func @transform_5(%arg0: i32) -> (i32, i32, i32) {
    %c0_i32 = arith.constant 0 : i32
    %c0_i32_0 = arith.constant 0 : i32
    %c0_i32_1 = arith.constant 0 : i32
    return %arg0, %c0_i32, %c0_i32_0 : i32, i32, i32
  }
}

</mosaic_0001>

<bundles_post_ra>
// kernel: tpu_custom_call.1
= control target key start
LH: loop header
LB: loop body
LE: loop exit
PB: predicated region body
PF: predicated region fallthrough
CT: control target
= control target key end

     0   :  { %10 = vsyncpa [#allocation3], 0  ;;  %s2390_s0 = inlined_call_operand.hbm [shape: f32[2,32,256], index: 0, kind: input, shape index: {}]   ;;  %s2391_s1 = inlined_call_operand.vmem [shape: f32[32,9], index: 1, kind: input, shape index: {}]   ;;  %s2392_s2 = inlined_call_operand.vmem [shape: f32[32,32], index: 2, kind: input, shape index: {}]   ;;  %s2393_s3 = inlined_call_operand.vmem [shape: f32[32,1], index: 3, kind: input, shape index: {}]   ;;  %s2394_s4 = inlined_call_operand.vmem [shape: f32[2,256], index: 4, kind: input, shape index: {}]   ;;  %s2395_s5 = inlined_call_operand.hbm [shape: f32[2,32,256], index: 5, kind: output, shape index: {}]  }
   0x1   :  { %12 = vsyncpa [#allocation3 + $0x1], 0 }
   0x2   :  { %13 = vsyncpa [#allocation4], 0 }
   0x3   :  { %15 = vsyncpa [#allocation4 + $0x1], 0  ;;  %s1654_s18 = smov 0   ;;  %s1656_s19 = smov 0  }
   0x4   :  { %s1658_s20 = smov 0   ;;  %s1660_s21 = smov 0  }
   0x5 LB: > { %s1675_s22 = sadd.s32 4294967295, %s1602_s21   ;;  %s1349_s23 = sadd.s32 4294967294, %s1602_s21   ;;  %s1602_s21 = sphi %s1660_s21, %s2407_s21   ;;  %s1598_s20 = sphi %s1658_s20, %s2406_s20   ;;  %s1594_s19 = sphi %s1656_s19, %s2405_s19   ;;  %s1590_s18 = sphi %s1654_s18, %s2404_s18  }
   0x6   : > { %s1679_s24 = sadd.s32 1, %s1602_s21   ;;  %s28_s25 = sadd.s32 1, %s1598_s20 }
   0x7   : > { %s25_s26 = ssub.s32 %s1602_s21, %s1679_s24  ;;  %p35_p0 = scmp.ne.s32.totalorder %s1598_s20, %s1594_s19 }
   0x8   : > { %p26_p1 = scmp.eq.s32.totalorder %s25_s26, 0  ;;  %p36_p2 = scmp.eq.s32.totalorder %s1602_s21, 0 }
   0x9   : > { %p41_p3 = scmp.ne.s32.totalorder %s1594_s19, %s1590_s18  ;;  %p42_p4 = scmp.eq.s32.totalorder %s1675_s22, 0 }
   0xa   : > { %s1691_s27 = scalar_select %p26_p1, %s1598_s20, %s28_s25  }
   0xb   : > { %p1693_p5 = por %p36_p2, %p35_p0  ;;  %p1697_p6 = por %p42_p4, %p41_p3 }
   0xc   : > { %p149_p7 = scmp.eq.s32.totalorder %s1675_s22, 1  ;;  %p155_p8 = scmp.eq.s32.totalorder %s1349_s23, 1 }
   0xd   : > { %p1394_p10 = scmp.lt.s32.totalorder %s1602_s21, 2  ;;  %s187_s7 = sand.u32 1, %s1598_s20  }
   0xe   : > { %p1704_p11 = por %p149_p7, %p35_p0  ;;  %p1708_p12 = por %p155_p8, %p41_p3 }
   0xf   : > { %s1372_s8 = sshll.u32 %s1602_s21, 6  ;;  %s1352_s9 = sshll.u32 %s187_s7, 6 }
  0x10   : > { %s196_s12 = scalar_lea.hbm %s2390_s0, %s1372_s8  ;;  %s191_s14 = scalar_lea.vmem [#allocation2], %s1352_s9 }
  0x11   : > { %s197_s13 = sshll.u32 %s196_s12, 4  ;;  %s199_s15 = sshll.u32 %s191_s14, 4  ;;  %s198_s13 = int_to_ptr.hbm [resolvable:$true] %s197_s13  ;;  %s200_s15 = int_to_ptr.vmem [resolvable:$true] %s199_s15 }
  0x12   : > { %p1719_p13 = pnand %p1394_p10, %p1693_p5  ;;  %p1355_p0 = scmp.ge.s32.totalorder %s1602_s21, 1 }
  0x13   : > { %p207_p1 = scmp.lt.s32.totalorder %s1602_s21, 3  ;;  %s188_s17 = scalar_lea.sflag [#allocation3], %s187_s7 }
  0x14   : > { %s1506_s23 = sshra.s32 %s198_s13, 4  ;;  %p1510_p3 = pneg %p1719_p13  ;;  %s1507_s23 = int_to_ptr.hbm [resolvable:$true] %s1506_s23 }
  0x15   : > { %s1508_s25 = scalar_lea.hbm %s1507_s23, 64  ;;  %s1513_s28 = scalar_lea.hbm %s2390_s0, 128 }
  0x16   : > { %p1509_p2 = scmp.ne.s32.totalorder %s1507_s23, %s1508_s25  ;;  %p1514_p5 = scmp.lt.s32.totalorder %s1507_s23, %s2390_s0 }
  0x17   : > { %p1515_p8 = scmp.lt.s32.totalorder %s1513_s28, %s1508_s25 }
  0x18   : > { %p1511_p4 = pnand %p1510_p3, %p1509_p2 }
  0x19   : > { %p1516_p10 = por %p1515_p8, %p1514_p5 }
  0x1a   : > { %p1512_p7 = pneg %p1511_p4 }
  0x1c   : > { %p1517_p9 = pnand %p1516_p10, %p1512_p7 }
  0x1e   : > { %1520 = shalt.err (!%p1517_p9)
}
  0x1f   : > { %s1604_s7 = smov 256   ;;  %s1605_s11 = smov 16  }
  0x20   : > { %1389 = dma.hbm_to_vmem [thread:$0]  (!%p1719_p13), %s198_s13, 1024, %s200_s15, %s188_s17, %s1604_s7, %s1604_s7, %s1605_s11  }
  0x21   : > { %p208_p2 = pnand %p1355_p0, %p207_p1 }
  0x23   : > { %211 = sbr.rel (%p208_p2) target bundleno = 1067 (0x42b), region = 40 }
  0x28   : > { %s1740_s12 = sand.u32 1, %s1594_s19  }
  0x29   : > { %s1356_s14 = sshll.u32 %s1740_s12, 6  ;;  %s214_s23 = scalar_lea.sflag [#allocation3], %s1740_s12 }
  0x2a   : > { %s1746_s25 = scalar_lea.vmem [#allocation2], %s1356_s14 }
  0x2b   : > { %1581 = dma.done.wait (%p1697_p6), %s214_s23, 1024  }
  0x2c   : > { %1583 = vsyncadd (%p1697_p6), %s214_s23, 4294966272  ;;  %v1606_v0 = vmov 3   ;;  %v1607_v1 = vmov 0   ;;  %v1756_v2 = vld [vmem:[%s2391_s1 + $0x10] sm:$0xff]  ;;  %v1761_v3 = vld [vmem:[%s2391_s1] sm:$0xff]  ;;  %v1608_v6 = vmov 6  }
  0x2d   : > { %1450 = vset.pattern.permute.xlu0 %v1606_v0  ;;  %1449 = vset.pattern.permute.xlu2 %v1606_v0  ;;  %v1769_v4 = vld [vmem:[%s2391_s1 + $0x18] sm:$0xff]  ;;  %v1774_v5 = vld [vmem:[%s2391_s1 + $0x8] sm:$0xff]  ;;  %v1609_v7 = vmov 1   ;;  %v491_v8 = vld [vmem:[%s2394_s4] ss:$2 sm:$0x3] }
  0x2e   : > { %1448 = vset.pattern.permute.xlu1 %v1607_v1  ;;  %306 = vperm.xlu0 %1450, %v1756_v2   ;;  %v493_v9 = vperm.slane %v491_v8, 0  ;;  %s1610_s7 = smov 111   ;;  %v1611_v10 = vmov 4   ;;  %v494_v11 = vperm.slane %v491_v8, 1  ;;  %v245_v12 = vld [vmem:[%s1746_s25] sm:$0xff]  ;;  %v246_v15 = vld [vmem:[%s1746_s25 + $0x8] sm:$0xff] }
  0x2f   : > { %277 = vperm.xlu1 %1448, %v1756_v2   ;;  %298 = vperm.xlu2 %1449, %v1761_v3   ;;  %v1794_v13 = vmax.f32 %v245_v12, 0.0  ;;  %v247_v18 = vld [vmem:[%s1746_s25 + $0x10] sm:$0xff]  ;;  %v1799_v19 = vmax.f32 %v246_v15, 0.0  ;;  %s1612_s11 = smov 112   ;;  %v248_v23 = vld [vmem:[%s1746_s25 + $0x18] sm:$0xff]  ;;  %v249_v28 = vld [vmem:[%s1746_s25 + $0x20] sm:$0xff] }
  0x30   : > { %v1803_v20 = vmax.f32 %v247_v18, 0.0  ;;  %v1808_v26 = vmax.f32 %v248_v23, 0.0  ;;  %v250_v29 = vld [vmem:[%s1746_s25 + $0x28] sm:$0xff]  ;;  %v1817_v30 = vmax.f32 %v249_v28, 0.0  ;;  %v251_v38 = vld [vmem:[%s1746_s25 + $0x30] sm:$0xff]  ;;  %v252_v39 = vld [vmem:[%s1746_s25 + $0x38] sm:$0xff] }
  0x31   : > { %v1819_v31 = vmax.f32 %v250_v29, 0.0  ;;  %v1832_v40 = vmax.f32 %v251_v38, 0.0  ;;  %v1834_v41 = vmax.f32 %v252_v39, 0.0  ;;  %s1613_s23 = smov 96   ;;  %v1614_v62 = vmov 7   ;;  %s1618_s15 = smov 113  }
  0x32   : > { %vm361_vm0 = vcmask 916480   ;;  %vm458_vm1 = vcmask 785408   ;;  %s1619_s16 = smov 127   ;;  %s1620_s17 = smov 126   ;;  %vm1014_vm2 = vcmask 924672   ;;  %vm499_vm3 = vcmask 908288  }
  0x33   : > { %vm752_vm4 = vcmask 1039360   ;;  %vm1067_vm5 = vcmask 1031168   ;;  %s1621_s29 = smov 17   ;;  %vm1164_vm6 = vcmask 138240   ;;  %vm1181_vm7 = vcmask 261120   ;;  %s244_s28 = scalar_lea.vmem [#allocation5], %s1356_s14 }
  0x34   : > { %s1373_s9 = sshll.u32 %s1675_s22, 6  ;;  %s1273_s14 = sshll.u32 %s244_s28, 4  ;;  %s1274_s14 = int_to_ptr.vmem [resolvable:$true] %s1273_s14 }
  0x35   : > { %s1261_s22 = scalar_lea.sflag [#allocation4], %s1740_s12 }
  0x36   : > { %1452 = vset.pattern.permute.xlu0 %v1608_v6 }
  0x37   : > { %282 = vperm.xlu1 %1448, %v1769_v4   ;;  %302 = vperm.xlu2 %1449, %v1774_v5  }
  0x38   : > { %395 = vperm.xlu0 %1452, %v1761_v3  }
  0x3f   : > { %1451 = vset.pattern.permute.xlu1 %v1606_v0  ;;  %1454 = vset.pattern.permute.xlu2 %v1608_v6 }
  0x40   : > { %310 = vperm.xlu1 %1451, %v1769_v4   ;;  %403 = vperm.xlu2 %1454, %v1756_v2  }
  0x41   : > { %1457 = vset.pattern.permute.xlu0 %v1609_v7 }
  0x42   : > { %497 = vrot.lane.b32.xlu0 %v494_v11, %s1610_s7 }
  0x48   : > { %1453 = vset.pattern.permute.xlu1 %v1608_v6  ;;  %495 = vrot.lane.b32.xlu2 %v493_v9, %s1610_s7 }
  0x49   : > { %399 = vperm.xlu1 %1453, %v1774_v5   ;;  %1456 = vset.pattern.permute.xlu2 %v1609_v7 }
  0x4a   : > { %525 = vperm.xlu0 %1457, %v1756_v2  }
  0x50   : > { %521 = vperm.xlu2 %1456, %v1774_v5  }
  0x51   : > { %407 = vperm.xlu1 %1453, %v1769_v4  }
  0x52   : > { %1460 = vset.pattern.permute.xlu0 %v1611_v10 }
  0x58   : > { %1458 = vset.pattern.permute.xlu2 %v1611_v10 }
  0x59   : > { %1455 = vset.pattern.permute.xlu1 %v1609_v7  ;;  %545 = vperm.xlu2 %1458, %v1761_v3  }
  0x5a   : > { %517 = vperm.xlu1 %1455, %v1761_v3  }
  0x61   : > { %553 = vperm.xlu2 %1458, %v1756_v2  }
  0x62   : > { %529 = vperm.xlu1 %1455, %v1769_v4  }
  0x69   : > { %1462 = vset.pattern.permute.xlu2 %v1614_v62 }
  0x6a   : > { %1459 = vset.pattern.permute.xlu1 %v1611_v10 }
  0x6b   : > { %549 = vperm.xlu1 %1459, %v1774_v5  }
  0x73   : > { %1461 = vset.pattern.permute.xlu1 %v1614_v62 }
  0x89   : > { %v299_v14 = vpop.permute.xlu2 %298 }
  0x8a   : > { %v313_v16 = vmul.f32 0.0, %v299_v14  ;;  %v314_v17 = vmul.f32 %v299_v14, %v1794_v13  ;;  %v315_v21 = vmul.f32 %v299_v14, %v1799_v19 }
  0x8c   : > { %337 = vrot.lane.b32.xlu2 %v313_v16, %s1612_s11  ;;  %339 = vrot.lane.b32.xlu1 %v314_v17, %s1612_s11 }
  0x91   : > { %v303_v22 = vpop.permute.xlu2 %302 }
  0x92   : > { %v316_v24 = vmul.f32 0.0, %v303_v22  ;;  %v317_v25 = vmul.f32 %v303_v22, %v1803_v20  ;;  %v318_v27 = vmul.f32 %v303_v22, %v1808_v26 }
  0x94   : > { %341 = vrot.lane.b32.xlu2 %v315_v21, %s1612_s11  ;;  %345 = vrot.lane.b32.xlu1 %v317_v25, %s1612_s11 }
  0x95   : > { %343 = vrot.lane.b32.xlu0 %v316_v24, %s1612_s11 }
  0x9a   : > { %v404_v47 = vpop.permute.xlu2 %403 }
  0x9b   : > { %v416_v57 = vmul.f32 %v404_v47, %v1817_v30  ;;  %v417_v58 = vmul.f32 %v404_v47, %v1819_v31  ;;  %v418_v59 = vmul.f32 0.0, %v404_v47 }
  0x9c   : > { %347 = vrot.lane.b32.xlu2 %v318_v27, %s1612_s11 }
  0xa0   : > { %v307_v32 = vpop.permute.xlu0 %306 }
  0xa1   : > { %v1821_v33 = vpop.permute.xlu1 %277  ;;  %v319_v34 = vmul.f32 0.0, %v307_v32  ;;  %v320_v35 = vmul.f32 %v307_v32, %v1817_v30  ;;  %v321_v36 = vmul.f32 %v307_v32, %v1819_v31 }
  0xa2   : > { %v1848_v54 = vpop.permute.xlu2 %495  ;;  %v291_v47 = vmul.f32 0.0, %v1821_v33 }
  0xa3   : > { %349 = vrot.lane.b32.xlu0 %v319_v34, %s1612_s11  ;;  %351 = vrot.lane.b32.xlu1 %v320_v35, %s1612_s11 }
  0xa4   : > { %353 = vrot.lane.b32.xlu2 %v321_v36, %s1612_s11 }
  0xa9   : > { %v1828_v37 = vpop.permute.xlu1 %282 }
  0xaa   : > { %v396_v46 = vpop.permute.xlu0 %395  ;;  %v1855_v60 = vpop.permute.xlu2 %521  ;;  %v296_v35 = vmul.f32 %v1828_v37, %v1834_v41 }
  0xab   : > { %v410_v48 = vmul.f32 %v396_v46, %v1794_v13  ;;  %v411_v49 = vmul.f32 %v396_v46, %v1799_v19  ;;  %v412_v50 = vmul.f32 0.0, %v396_v46 }
  0xb2   : > { %v311_v42 = vpop.permute.xlu1 %310 }
  0xb3   : > { %v322_v43 = vmul.f32 0.0, %v311_v42  ;;  %v323_v44 = vmul.f32 %v311_v42, %v1832_v40  ;;  %v324_v45 = vmul.f32 %v311_v42, %v1834_v41  ;;  %v546_v8 = vpop.permute.xlu2 %545 }
  0xb4   : > { %v561_v9 = vmul.f32 %v546_v8, %v1799_v19  ;;  %v560_v10 = vmul.f32 %v546_v8, %v1794_v13  ;;  %v1884_v22 = vpop.permute.xlu0 %497 }
  0xb5   : > { %355 = vrot.lane.b32.xlu0 %v322_v43, %s1612_s11  ;;  %359 = vrot.lane.b32.xlu2 %v324_v45, %s1612_s11 }
  0xb6   : > { %357 = vrot.lane.b32.xlu1 %v323_v44, %s1612_s11 }
  0xbb   : > { %v400_v51 = vpop.permute.xlu1 %399  ;;  %v554_v12 = vpop.permute.xlu2 %553 }
  0xbc   : > { %v413_v52 = vmul.f32 %v400_v51, %v1803_v20  ;;  %v414_v53 = vmul.f32 %v400_v51, %v1808_v26  ;;  %v415_v55 = vmul.f32 0.0, %v400_v51  ;;  %v564_v14 = vmul.f32 %v554_v12, %v1817_v30  ;;  %v1890_v24 = vpop.permute.xlu0 %525 }
  0xbd   : > { %436 = vrot.lane.b32.xlu0 %v411_v49, %s1613_s23  ;;  %434 = vrot.lane.b32.xlu2 %v410_v48, %s1613_s23  ;;  %v565_v18 = vmul.f32 %v554_v12, %v1819_v31  ;;  %v294_v51 = vmul.f32 0.0, %v1828_v37 }
  0xbe   : > { %438 = vrot.lane.b32.xlu1 %v412_v50, %s1613_s23 }
  0xc3   : > { %v408_v56 = vpop.permute.xlu1 %407 }
  0xc4   : > { %v419_v63 = vmul.f32 %v408_v56, %v1832_v40  ;;  %v420_v0 = vmul.f32 %v408_v56, %v1834_v41  ;;  %v421_v6 = vmul.f32 0.0, %v408_v56 }
  0xc5   : > { %442 = vrot.lane.b32.xlu0 %v414_v53, %s1613_s23  ;;  %440 = vrot.lane.b32.xlu2 %v413_v52, %s1613_s23  ;;  %v295_v52 = vmul.f32 %v1828_v37, %v1832_v40 }
  0xc6   : > { %444 = vrot.lane.b32.xlu1 %v415_v55, %s1613_s23 }
  0xcc   : > { %v1857_v61 = vpop.permute.xlu1 %517 }
  0xcd   : > { %448 = vrot.lane.b32.xlu0 %v417_v58, %s1613_s23  ;;  %446 = vrot.lane.b32.xlu2 %v416_v57, %s1613_s23 }
  0xce   : > { %450 = vrot.lane.b32.xlu1 %v418_v59, %s1613_s23 }
  0xd4   : > { %v1864_v7 = vpop.permute.xlu1 %529 }
  0xd5   : > { %454 = vrot.lane.b32.xlu0 %v420_v0, %s1613_s23  ;;  %452 = vrot.lane.b32.xlu2 %v419_v63, %s1613_s23 }
  0xd6   : > { %456 = vrot.lane.b32.xlu1 %v421_v6, %s1613_s23 }
  0xdd   : > { %557 = vperm.xlu0 %1460, %v1769_v4   ;;  %578 = vrot.lane.b32.xlu2 %v561_v9, %s1612_s11  ;;  %v550_v11 = vpop.permute.xlu1 %549  ;;  %v534_v9 = vmul.f32 %v1857_v61, %v1799_v19 }
  0xde   : > { %576 = vrot.lane.b32.xlu1 %v560_v10, %s1612_s11  ;;  %v563_v15 = vmul.f32 %v550_v11, %v1808_v26  ;;  %v562_v16 = vmul.f32 %v550_v11, %v1803_v20 }
  0xe5   : > { %584 = vrot.lane.b32.xlu0 %v564_v14, %s1612_s11  ;;  %582 = vrot.lane.b32.xlu2 %v563_v15, %s1612_s11 }
  0xe6   : > { %580 = vrot.lane.b32.xlu1 %v562_v16, %s1612_s11  ;;  %1463 = vset.pattern.permute.xlu0 %v1614_v62  ;;  %v338_v17 = vpop.permute.xlu2 %337  ;;  %v1615_v62 = vmov 5   ;;  %v292_v16 = vmul.f32 %v1821_v33, %v1817_v30 }
  0xee   : > { %586 = vrot.lane.b32.xlu1 %v565_v18, %s1612_s11  ;;  %v1882_v21 = vpop.permute.xlu2 %341 }
  0xf6   : > { %621 = vperm.xlu1 %1461, %v1761_v3   ;;  %v1887_v23 = vpop.permute.xlu2 %347 }
  0xfe   : > { %633 = vperm.xlu1 %1461, %v1769_v4   ;;  %v1892_v25 = vpop.permute.xlu1 %339  ;;  %v354_v28 = vpop.permute.xlu2 %353 }
  0xff   : > { %v1896_v27 = vsel %vm361_vm0, %v338_v17, %v1892_v25  ;;  %v293_v17 = vmul.f32 %v1821_v33, %v1819_v31 }
 0x106   : > { %v1898_v29 = vpop.permute.xlu1 %345  ;;  %1465 = vset.pattern.permute.xlu1 %v1615_v62 }
 0x107   : > { %v344_v32 = vpop.permute.xlu0 %343  ;;  %822 = vperm.xlu1 %1465, %v1756_v2  }
 0x108   : > { %v1902_v34 = vsel %vm361_vm0, %v344_v32, %v1898_v29 }
 0x10f   : > { %v360_v36 = vpop.permute.xlu2 %359 }
 0x110   : > { %v393_v38 = vadd.f32 %v360_v36, %v296_v35  ;;  %v390_v35 = vadd.f32 %v354_v28, %v293_v17 }
 0x115   : > { %v350_v39 = vpop.permute.xlu0 %349  ;;  %v352_v42 = vpop.permute.xlu1 %351 }
 0x116   : > { %v366_v43 = vsel %vm361_vm0, %v350_v39, %v352_v42  ;;  %v367_v44 = vsel %vm361_vm0, %v352_v42, %v354_v28  ;;  %v1616_v28 = vmov 8  }
 0x117   : > { %v1908_v45 = vpop.permute.xlu2 %434  ;;  %v388_v48 = vadd.f32 %v366_v43, %v291_v47  ;;  %v389_v18 = vadd.f32 %v367_v44, %v292_v16  ;;  %1468 = vset.pattern.permute.xlu1 %v1616_v28 }
 0x118   : > { %918 = vperm.xlu1 %1468, %v1756_v2  }
 0x11f   : > { %v1910_v46 = vpop.permute.xlu2 %440 }
 0x120   : > { %914 = vperm.xlu1 %1468, %v1774_v5  }
 0x127   : > { %v356_v49 = vpop.permute.xlu0 %355  ;;  %v447_v50 = vpop.permute.xlu2 %446 }
 0x128   : > { %v1916_v53 = vadd.f32 %v447_v50, %v388_v48  ;;  %v358_v55 = vpop.permute.xlu1 %357  ;;  %1504 = vset.pattern.permute.xlu1 %v1607_v1 }
 0x129   : > { %v368_v56 = vsel %vm361_vm0, %v356_v49, %v358_v55  ;;  %v369_v57 = vsel %vm361_vm0, %v358_v55, %v360_v36 }
 0x12a   : > { %v391_v58 = vadd.f32 %v368_v56, %v294_v51  ;;  %v392_v59 = vadd.f32 %v369_v57, %v295_v52  ;;  %v533_v56 = vmul.f32 %v1857_v61, %v1794_v13 }
 0x12f   : > { %v1922_v63 = vpop.permute.xlu0 %436  ;;  %v453_v0 = vpop.permute.xlu2 %452 }
 0x130   : > { %v1924_v6 = vadd.f32 %v453_v0, %v391_v58  ;;  %v439_v37 = vpop.permute.xlu1 %438 }
 0x131   : > { %v1928_v8 = vsel %vm458_vm1, %v1922_v63, %v439_v37 }
 0x137   : > { %v1932_v10 = vpop.permute.xlu0 %442  ;;  %v579_v11 = vpop.permute.xlu2 %578 }
 0x138   : > { %v1934_v12 = vadd.f32 %v579_v11, %v534_v9  ;;  %v445_v14 = vpop.permute.xlu1 %444  ;;  %v535_v9 = vmul.f32 0.0, %v1855_v60 }
 0x139   : > { %v1938_v15 = vsel %vm458_vm1, %v1932_v10, %v445_v14 }
 0x13f   : > { %v449_v32 = vpop.permute.xlu0 %448  ;;  %v1973_v14 = vpop.permute.xlu2 %582 }
 0x140   : > { %v463_v36 = vsel %vm458_vm1, %v447_v50, %v449_v32  ;;  %v451_v39 = vpop.permute.xlu1 %450  ;;  %v532_v50 = vmul.f32 0.0, %v1857_v61  ;;  %v536_v61 = vmul.f32 %v1855_v60, %v1803_v20 }
 0x141   : > { %v1945_v42 = vadd.f32 %v463_v36, %v389_v18  ;;  %v464_v43 = vsel %vm458_vm1, %v449_v32, %v451_v39  ;;  %v540_v32 = vmul.f32 %v1890_v24, %v1819_v31 }
 0x142   : > { %v1948_v47 = vadd.f32 %v464_v43, %v390_v35  ;;  %v539_v35 = vmul.f32 %v1890_v24, %v1817_v30 }
 0x143   : > { %2401 = vst [vmem:[#allocation8_spill] sm:$0xff] %v1945_v42 }
 0x147   : > { %v455_v48 = vpop.permute.xlu0 %454 }
 0x148   : > { %v465_v49 = vsel %vm458_vm1, %v453_v0, %v455_v48  ;;  %v457_v51 = vpop.permute.xlu1 %456 }
 0x149   : > { %v1951_v52 = vadd.f32 %v465_v49, %v392_v59  ;;  %v466_v33 = vsel %vm458_vm1, %v455_v48, %v457_v51 }
 0x14a   : > { %v1954_v44 = vadd.f32 %v466_v33, %v393_v38  ;;  %v1617_v33 = vmov 2  }
 0x14f   : > { %v558_v55 = vpop.permute.xlu0 %557 }
 0x150   : > { %v566_v57 = vmul.f32 %v558_v55, %v1832_v40  ;;  %v567_v58 = vmul.f32 %v558_v55, %v1834_v41  ;;  %v577_v59 = vpop.permute.xlu1 %576 }
 0x151   : > { %v592_v0 = vsel %vm361_vm0, %v577_v59, %v579_v11  ;;  %v1963_v37 = vadd.f32 %v577_v59, %v532_v50 }
 0x152   : > { %v1965_v38 = vadd.f32 %v592_v0, %v533_v56  ;;  %590 = vrot.lane.b32.xlu0 %v567_v58, %s1612_s11  ;;  %588 = vrot.lane.b32.xlu2 %v566_v57, %s1612_s11 }
 0x157   : > { %v1988_v36 = vpop.permute.xlu0 %584 }
 0x158   : > { %v581_v16 = vpop.permute.xlu1 %580 }
 0x159   : > { %v593_v11 = vsel %vm361_vm0, %v581_v16, %v1973_v14  ;;  %v1977_v17 = vadd.f32 %v581_v16, %v535_v9  ;;  %v542_v16 = vmul.f32 %v1864_v7, %v1832_v40 }
 0x15a   : > { %v1979_v18 = vadd.f32 %v593_v11, %v536_v61  ;;  %629 = vperm.xlu0 %1463, %v1756_v2   ;;  %625 = vperm.xlu2 %1462, %v1774_v5   ;;  %v543_v61 = vmul.f32 %v1864_v7, %v1834_v41 }
 0x160   : > { %v587_v39 = vpop.permute.xlu1 %586 }
 0x161   : > { %v594_v43 = vsel %vm361_vm0, %v1988_v36, %v587_v39  ;;  %v1992_v48 = vadd.f32 %v587_v39, %v540_v32 }
 0x162   : > { %v1994_v49 = vadd.f32 %v594_v43, %v539_v35  ;;  %1467 = vset.pattern.permute.xlu0 %v1615_v62  ;;  %1464 = vset.pattern.permute.xlu2 %v1615_v62 }
 0x163   : > { %818 = vperm.xlu0 %1467, %v1774_v5   ;;  %826 = vperm.xlu2 %1464, %v1769_v4  }
 0x168   : > { %v2000_v51 = vpop.permute.xlu1 %621 }
 0x16b   : > { %1471 = vset.pattern.permute.xlu0 %v1617_v33  ;;  %1466 = vset.pattern.permute.xlu2 %v1616_v28 }
 0x16c   : > { %798 = vperm.xlu0 %1471, %v1769_v4   ;;  %922 = vperm.xlu2 %1466, %v1769_v4   ;;  %v541_v4 = vmul.f32 0.0, %v1864_v7 }
 0x170   : > { %v634_v50 = vpop.permute.xlu1 %633 }
 0x171   : > { %v645_v55 = vmul.f32 %v634_v50, %v1832_v40  ;;  %v647_v7 = vmul.f32 0.0, %v634_v50 }
 0x174   : > { %678 = vrot.lane.b32.xlu0 %v645_v55, %s1613_s23  ;;  %1469 = vset.pattern.permute.xlu2 %v1615_v62 }
 0x175   : > { %814 = vperm.xlu2 %1469, %v1761_v3  }
 0x179   : > { %v823_v56 = vpop.permute.xlu1 %822 }
 0x17a   : > { %v835_v57 = vmul.f32 %v823_v56, %v1817_v30 }
 0x17c   : > { %865 = vrot.lane.b32.xlu0 %v835_v57, %s1612_s11  ;;  %v646_v57 = vmul.f32 %v634_v50, %v1834_v41 }
 0x17d   : > { %1470 = vset.pattern.permute.xlu2 %v1616_v28 }
 0x17e   : > { %910 = vperm.xlu2 %1470, %v1761_v3  }
 0x186   : > { %1472 = vset.pattern.permute.xlu2 %v1617_v33 }
 0x1ac   : > { %v589_v58 = vpop.permute.xlu2 %588 }
 0x1ad   : > { %v2012_v59 = vadd.f32 %v589_v58, %v541_v4 }
 0x1b4   : > { %v2014_v0 = vpop.permute.xlu2 %625 }
 0x1bd   : > { %v827_v9 = vpop.permute.xlu2 %826 }
 0x1be   : > { %v838_v62 = vmul.f32 %v827_v9, %v1832_v40  ;;  %v839_v28 = vmul.f32 %v827_v9, %v1834_v41  ;;  %v840_v39 = vmul.f32 0.0, %v827_v9  ;;  %v836_v9 = vmul.f32 %v823_v56, %v1819_v31 }
 0x1c0   : > { %873 = vrot.lane.b32.xlu2 %v839_v28, %s1612_s11  ;;  %871 = vrot.lane.b32.xlu1 %v838_v62, %s1612_s11 }
 0x1c4   : > { %v591_v11 = vpop.permute.xlu0 %590 }
 0x1c5   : > { %v595_v32 = vsel %vm361_vm0, %v589_v58, %v591_v11  ;;  %v2025_v35 = vadd.f32 %v591_v11, %v543_v61 }
 0x1c6   : > { %v2027_v43 = vadd.f32 %v595_v32, %v542_v16  ;;  %v923_v33 = vpop.permute.xlu2 %922  ;;  %v919_v16 = vpop.permute.xlu1 %918 }
 0x1c7   : > { %v934_v55 = vmul.f32 %v923_v33, %v1832_v40  ;;  %v935_v28 = vmul.f32 %v923_v33, %v1834_v41  ;;  %v936_v61 = vmul.f32 0.0, %v923_v33  ;;  %v933_v11 = vmul.f32 0.0, %v919_v16 }
 0x1c8   : > { %794 = vperm.xlu2 %1472, %v1756_v2   ;;  %875 = vrot.lane.b32.xlu1 %v840_v39, %s1612_s11  ;;  %v837_v2 = vmul.f32 0.0, %v823_v56 }
 0x1c9   : > { %967 = vrot.lane.b32.xlu0 %v934_v55, %s1613_s23  ;;  %v931_v55 = vmul.f32 %v919_v16, %v1817_v30 }
 0x1cc   : > { %v630_v4 = vpop.permute.xlu0 %629 }
 0x1cd   : > { %v644_v58 = vmul.f32 0.0, %v630_v4  ;;  %v642_v56 = vmul.f32 %v630_v4, %v1817_v30  ;;  %v643_v32 = vmul.f32 %v630_v4, %v1819_v31 }
 0x1d0   : > { %680 = vrot.lane.b32.xlu1 %v646_v57, %s1613_s23  ;;  %682 = vrot.lane.b32.xlu2 %v647_v7, %s1613_s23  ;;  %v932_v57 = vmul.f32 %v919_v16, %v1819_v31  ;;  %v1358_v7 = vld [vmem:[%s2394_s4 + $0x1] ss:$2 sm:$0x3] }
 0x1d1   : > { %790 = vperm.xlu0 %1471, %v1774_v5   ;;  %1505 = vset.pattern.permute.xlu2 %v1607_v1  ;;  %v1009_v4 = vperm.slane %v1358_v7, 1 }
 0x1d5   : > { %v819_v50 = vpop.permute.xlu0 %818 }
 0x1d6   : > { %v834_v62 = vmul.f32 0.0, %v819_v50  ;;  %v832_v39 = vmul.f32 %v819_v50, %v1803_v20  ;;  %v833_v33 = vmul.f32 %v819_v50, %v1808_v26  ;;  %v641_v50 = vmul.f32 0.0, %v2014_v0 }
 0x1d8   : > { %867 = vrot.lane.b32.xlu1 %v836_v9, %s1612_s11  ;;  %869 = vrot.lane.b32.xlu2 %v837_v2, %s1612_s11  ;;  %v639_v9 = vmul.f32 %v2014_v0, %v1803_v20  ;;  %v640_v2 = vmul.f32 %v2014_v0, %v1808_v26  ;;  %v915_v0 = vpop.permute.xlu1 %914 }
 0x1d9   : > { %676 = vrot.lane.b32.xlu0 %v644_v58, %s1613_s23  ;;  %v1008_v58 = vperm.slane %v1358_v7, 0  ;;  %v928_v16 = vmul.f32 %v915_v0, %v1803_v20 }
 0x1e0   : > { %969 = vrot.lane.b32.xlu1 %v935_v28, %s1613_s23  ;;  %971 = vrot.lane.b32.xlu2 %v936_v61, %s1613_s23  ;;  %v2076_v28 = vpop.permute.xlu0 %798 }
 0x1e1   : > { %863 = vrot.lane.b32.xlu0 %v834_v62, %s1612_s11 }
 0x1e8   : > { %672 = vrot.lane.b32.xlu1 %v642_v56, %s1613_s23  ;;  %674 = vrot.lane.b32.xlu2 %v643_v32, %s1613_s23  ;;  %v930_v56 = vmul.f32 0.0, %v915_v0  ;;  %v679_v32 = vpop.permute.xlu0 %678 }
 0x1e9   : > { %965 = vrot.lane.b32.xlu0 %v933_v11, %s1613_s23  ;;  %v929_v11 = vmul.f32 %v915_v0, %v1808_v26 }
 0x1f0   : > { %859 = vrot.lane.b32.xlu1 %v832_v39, %s1612_s11  ;;  %861 = vrot.lane.b32.xlu2 %v833_v33, %s1612_s11  ;;  %v636_v33 = vmul.f32 %v2000_v51, %v1794_v13 }
 0x1f1   : > { %786 = vperm.xlu0 %1471, %v1761_v3  }
 0x1f8   : > { %963 = vrot.lane.b32.xlu2 %v932_v57, %s1613_s23  ;;  %961 = vrot.lane.b32.xlu1 %v931_v55, %s1613_s23  ;;  %v637_v55 = vmul.f32 %v2000_v51, %v1799_v19  ;;  %v638_v57 = vmul.f32 0.0, %v2000_v51 }
 0x1f9   : > { %1473 = vset.pattern.permute.xlu0 %v1607_v1  ;;  %v815_v1 = vpop.permute.xlu2 %814 }
 0x1fa   : > { %267 = vperm.xlu0 %1473, %v1761_v3   ;;  %v829_v3 = vmul.f32 %v815_v1, %v1794_v13  ;;  %v830_v62 = vmul.f32 %v815_v1, %v1799_v19 }
 0x200   : > { %1012 = vrot.lane.b32.xlu2 %v1009_v4, %s1618_s15  ;;  %1010 = vrot.lane.b32.xlu1 %v1008_v58, %s1618_s15  ;;  %v866_v4 = vpop.permute.xlu0 %865 }
 0x201   : > { %v911_v61 = vpop.permute.xlu2 %910 }
 0x202   : > { %272 = vperm.xlu0 %1473, %v1774_v5   ;;  %v831_v5 = vmul.f32 0.0, %v815_v1 }
 0x208   : > { %668 = vrot.lane.b32.xlu2 %v640_v2, %s1613_s23  ;;  %666 = vrot.lane.b32.xlu1 %v639_v9, %s1613_s23  ;;  %v925_v9 = vmul.f32 %v911_v61, %v1794_v13  ;;  %v926_v2 = vmul.f32 %v911_v61, %v1799_v19 }
 0x20a   : > { %670 = vrot.lane.b32.xlu0 %v641_v50, %s1613_s23  ;;  %v927_v50 = vmul.f32 0.0, %v911_v61 }
 0x210   : > { %855 = vrot.lane.b32.xlu2 %v830_v62, %s1612_s11  ;;  %853 = vrot.lane.b32.xlu1 %v829_v3, %s1612_s11  ;;  %v713_v3 = vadd.f32 %v679_v32, %v2012_v59  ;;  %v811_v62 = vmul.f32 %v2076_v28, %v1832_v40 }
 0x212   : > { %857 = vrot.lane.b32.xlu0 %v831_v5, %s1612_s11  ;;  %s1272_s11 = scalar_lea.hbm %s2395_s5, %s1373_s9 }
 0x218   : > { %957 = vrot.lane.b32.xlu2 %v929_v11, %s1613_s23  ;;  %955 = vrot.lane.b32.xlu1 %v928_v16, %s1613_s23 }
 0x21a   : > { %v874_v39 = vpop.permute.xlu2 %873  ;;  %959 = vrot.lane.b32.xlu0 %v930_v56, %s1613_s23 }
 0x220   : > { %662 = vrot.lane.b32.xlu2 %v637_v55, %s1613_s23  ;;  %660 = vrot.lane.b32.xlu1 %v636_v33, %s1613_s23 }
 0x222   : > { %v795_v7 = vpop.permute.xlu2 %794  ;;  %664 = vrot.lane.b32.xlu0 %v638_v57, %s1613_s23 }
 0x223   : > { %v807_v58 = vmul.f32 0.0, %v795_v7 }
 0x225   : > { %v2096_v1 = vadd.f32 %v866_v4, %v807_v58 }
 0x228   : > { %949 = vrot.lane.b32.xlu1 %v925_v9, %s1613_s23  ;;  %951 = vrot.lane.b32.xlu2 %v926_v2, %s1613_s23 }
 0x22a   : > { %v683_v51 = vpop.permute.xlu2 %682  ;;  %953 = vrot.lane.b32.xlu0 %v927_v50, %s1613_s23  ;;  %v808_v50 = vmul.f32 %v795_v7, %v1817_v30  ;;  %s1275_s23 = sshll.u32 %s1272_s11, 4  ;;  %s1276_s23 = int_to_ptr.hbm [resolvable:$true] %s1275_s23 }
 0x22b   : > { %s1550_s25 = sshra.s32 %s1276_s23, 4  ;;  %s1551_s25 = int_to_ptr.hbm [resolvable:$true] %s1550_s25 }
 0x22c   : > { %s1552_s13 = scalar_lea.hbm %s1551_s25, 64  ;;  %p1557_p0 = scmp.lt.s32.totalorder %s1551_s25, %s2395_s5 }
 0x22d   : > { %p1553_p6 = scmp.ne.s32.totalorder %s1551_s25, %s1552_s13 }
 0x22f   : > { %p1554_p9 = pnand %p1553_p6, %p1704_p11 }
 0x230   : > { %746 = vrot.lane.b32.xlu1 %v713_v3, %s1619_s16  ;;  %v809_v3 = vmul.f32 %v795_v7, %v1819_v31 }
 0x231   : > { %p1555_p13 = pneg %p1554_p9 }
 0x232   : > { %v870_v5 = vpop.permute.xlu2 %869  ;;  %v2105_v0 = vpop.permute.xlu1 %871 }
 0x233   : > { %v883_v61 = vsel %vm361_vm0, %v2105_v0, %v874_v39 }
 0x234   : > { %v2109_v16 = vadd.f32 %v883_v61, %v811_v62 }
 0x23a   : > { %v972_v11 = vpop.permute.xlu2 %971  ;;  %v876_v56 = vpop.permute.xlu1 %875 }
 0x23b   : > { %v2111_v33 = vpop.permute.xlu0 %967 }
 0x242   : > { %v675_v55 = vpop.permute.xlu2 %674  ;;  %v681_v59 = vpop.permute.xlu1 %680 }
 0x243   : > { %v690_v57 = vsel %vm458_vm1, %v679_v32, %v681_v59  ;;  %v691_v58 = vsel %vm458_vm1, %v681_v59, %v683_v51  ;;  %v2115_v9 = vpop.permute.xlu0 %790 }
 0x244   : > { %v714_v40 = vadd.f32 %v690_v57, %v2027_v43  ;;  %v715_v2 = vadd.f32 %v691_v58, %v2025_v35  ;;  %v806_v7 = vmul.f32 %v2115_v9, %v1808_v26 }
 0x246   : > { %750 = vrot.lane.b32.xlu0 %v715_v2, %s1619_s16  ;;  %748 = vrot.lane.b32.xlu2 %v714_v40, %s1619_s16  ;;  %v812_v40 = vmul.f32 %v2076_v28, %v1834_v41 }
 0x24a   : > { %v862_v62 = vpop.permute.xlu2 %861  ;;  %v868_v61 = vpop.permute.xlu1 %867 }
 0x24b   : > { %v881_v32 = vsel %vm361_vm0, %v866_v4, %v868_v61  ;;  %v882_v51 = vsel %vm361_vm0, %v868_v61, %v870_v5  ;;  %v677_v59 = vpop.permute.xlu0 %676  ;;  %v884_v5 = vsel %vm361_vm0, %v874_v39, %v876_v56 }
 0x24c   : > { %v2125_v42 = vadd.f32 %v881_v32, %v808_v50  ;;  %v2127_v43 = vadd.f32 %v882_v51, %v809_v3  ;;  %v689_v35 = vsel %vm458_vm1, %v675_v55, %v677_v59  ;;  %v538_v50 = vmul.f32 0.0, %v1890_v24 }
 0x24d   : > { %v712_v57 = vadd.f32 %v689_v35, %v1992_v48  ;;  %v908_v3 = vadd.f32 %v884_v5, %v812_v40  ;;  %v805_v24 = vmul.f32 %v2115_v9, %v1803_v20 }
 0x24e   : > { %v614_v61 = vadd.f32 %v1988_v36, %v538_v50  ;;  %v363_v50 = vsel %vm361_vm0, %v1892_v25, %v1882_v21 }
 0x24f   : > { %744 = vrot.lane.b32.xlu0 %v712_v57, %s1619_s16 }
 0x252   : > { %v2132_v30 = vpop.permute.xlu2 %963  ;;  %v970_v31 = vpop.permute.xlu1 %969 }
 0x253   : > { %v864_v4 = vpop.permute.xlu0 %863  ;;  %v980_v48 = vsel %vm458_vm1, %v970_v31, %v972_v11 }
 0x254   : > { %v880_v58 = vsel %vm361_vm0, %v862_v62, %v864_v4  ;;  %v1004_v32 = vadd.f32 %v980_v48, %v908_v3  ;;  %v810_v4 = vmul.f32 0.0, %v2076_v28 }
 0x255   : > { %v2140_v2 = vadd.f32 %v880_v58, %v806_v7 }
 0x256   : > { %v906_v3 = vadd.f32 %v2105_v0, %v810_v4 }
 0x25a   : > { %v2145_v51 = vpop.permute.xlu2 %1012  ;;  %v673_v59 = vpop.permute.xlu1 %672 }
 0x25b   : > { %v688_v39 = vsel %vm458_vm1, %v673_v59, %v675_v55  ;;  %v710_v56 = vadd.f32 %v673_v59, %v614_v61  ;;  %v966_v35 = vpop.permute.xlu0 %965  ;;  %v1030_v57 = vmul.f32 %v2145_v51, %v1004_v32  ;;  %v459_v59 = vsel %vm458_vm1, %v1908_v45, %v1922_v63 }
 0x25c   : > { %v711_v41 = vadd.f32 %v688_v39, %v1994_v49  ;;  %v1002_v39 = vadd.f32 %v2111_v33, %v906_v3 }
 0x25d   : > { %1065 = vrot.lane.b32.xlu0 %v1030_v57, %s1620_s17  ;;  %740 = vrot.lane.b32.xlu1 %v710_v56, %s1619_s16 }
 0x25e   : > { %742 = vrot.lane.b32.xlu2 %v711_v41, %s1619_s16 }
 0x262   : > { %v2155_v36 = vpop.permute.xlu1 %859  ;;  %v669_v57 = vpop.permute.xlu2 %668 }
 0x263   : > { %v879_v11 = vsel %vm361_vm0, %v2155_v36, %v862_v62  ;;  %v2159_v55 = vpop.permute.xlu0 %786  ;;  %v979_v62 = vsel %vm458_vm1, %v2111_v33, %v970_v31 }
 0x264   : > { %v2161_v7 = vadd.f32 %v879_v11, %v805_v24  ;;  %v1003_v0 = vadd.f32 %v979_v62, %v2109_v16  ;;  %v365_v16 = vsel %vm361_vm0, %v1898_v29, %v1887_v23  ;;  %v537_v29 = vmul.f32 %v1855_v60, %v1808_v26 }
 0x266   : > { %v613_v3 = vadd.f32 %v1973_v14, %v537_v29 }
 0x26a   : > { %v962_v49 = vpop.permute.xlu1 %961 }
 0x26b   : > { %v977_v60 = vsel %vm458_vm1, %v962_v49, %v2132_v30  ;;  %v999_v14 = vadd.f32 %v962_v49, %v2096_v1 }
 0x26c   : > { %v268_v5 = vpop.permute.xlu0 %267 }
 0x26d   : > { %v285_v58 = vmul.f32 0.0, %v268_v5  ;;  %v286_v40 = vmul.f32 %v268_v5, %v1794_v13  ;;  %v287_v48 = vmul.f32 %v268_v5, %v1799_v19 }
 0x26f   : > { %v2173_v61 = vadd.f32 %v1896_v27, %v285_v58  ;;  %v383_v32 = vadd.f32 %v363_v50, %v286_v40  ;;  %v384_v28 = vadd.f32 %v1882_v21, %v287_v48 }
 0x271   : > { %v2180_v56 = vadd.f32 %v459_v59, %v383_v32  ;;  %v2183_v25 = vadd.f32 %v1928_v8, %v384_v28  ;;  %v856_v32 = vpop.permute.xlu2 %855 }
 0x272   : > { %v2186_v31 = vpop.permute.xlu1 %1010 }
 0x273   : > { %v1028_v27 = vmul.f32 %v2186_v31, %v1002_v39  ;;  %v2191_v21 = vsel %vm1014_vm2, %v2186_v31, %v2145_v51  ;;  %v1025_v59 = vmul.f32 %v2186_v31, %v999_v14 }
 0x274   : > { %v273_v63 = vpop.permute.xlu0 %272  ;;  %v1029_v41 = vmul.f32 %v2191_v21, %v1003_v0 }
 0x275   : > { %v288_v33 = vmul.f32 0.0, %v273_v63  ;;  %v289_v24 = vmul.f32 %v273_v63, %v1803_v20  ;;  %v290_v8 = vmul.f32 %v273_v63, %v1808_v26  ;;  %1061 = vrot.lane.b32.xlu1 %v1028_v27, %s1620_s17  ;;  %v461_v20 = vsel %vm458_vm1, %v1910_v46, %v1932_v10 }
 0x276   : > { %1063 = vrot.lane.b32.xlu2 %v1029_v41, %s1620_s17  ;;  %v978_v26 = vsel %vm458_vm1, %v2132_v30, %v966_v35 }
 0x277   : > { %v2202_v11 = vadd.f32 %v1902_v34, %v288_v33  ;;  %v386_v4 = vadd.f32 %v365_v16, %v289_v24  ;;  %v387_v5 = vadd.f32 %v1887_v23, %v290_v8 }
 0x279   : > { %v2208_v58 = vadd.f32 %v461_v20, %v386_v4  ;;  %v2211_v40 = vadd.f32 %v1938_v15, %v387_v5  ;;  %v958_v35 = vpop.permute.xlu2 %957  ;;  %v801_v20 = vmul.f32 0.0, %v2159_v55 }
 0x27a   : > { %v667_v48 = vpop.permute.xlu1 %666 }
 0x27b   : > { %v686_v50 = vsel %vm458_vm1, %v667_v48, %v669_v57  ;;  %v707_v34 = vadd.f32 %v667_v48, %v1977_v17  ;;  %v1001_v17 = vadd.f32 %v978_v26, %v2127_v43 }
 0x27c   : > { %v708_v23 = vadd.f32 %v686_v50, %v1979_v18  ;;  %v671_v62 = vpop.permute.xlu0 %670  ;;  %v1000_v18 = vadd.f32 %v977_v60, %v2125_v42  ;;  %v804_v42 = vmul.f32 0.0, %v2115_v9 }
 0x27d   : > { %v687_v10 = vsel %vm458_vm1, %v669_v57, %v671_v62  ;;  %734 = vrot.lane.b32.xlu1 %v707_v34, %s1619_s16  ;;  %v1027_v30 = vmul.f32 %v2145_v51, %v1001_v17 }
 0x27e   : > { %v709_v15 = vadd.f32 %v687_v10, %v613_v3  ;;  %736 = vrot.lane.b32.xlu2 %v708_v23, %s1619_s16  ;;  %v1026_v0 = vmul.f32 %v2191_v21, %v1000_v18  ;;  %v900_v24 = vadd.f32 %v2155_v36, %v804_v42 }
 0x280   : > { %738 = vrot.lane.b32.xlu0 %v709_v15, %s1619_s16 }
 0x281   : > { %v663_v43 = vpop.permute.xlu2 %662 }
 0x282   : > { %v854_v28 = vpop.permute.xlu1 %853 }
 0x283   : > { %v877_v29 = vsel %vm361_vm0, %v854_v28, %v856_v32  ;;  %v897_v23 = vadd.f32 %v854_v28, %v801_v20 }
 0x284   : > { %v858_v39 = vpop.permute.xlu0 %857 }
 0x285   : > { %1055 = vrot.lane.b32.xlu1 %v1025_v59, %s1620_s17 }
 0x286   : > { %1057 = vrot.lane.b32.xlu2 %v1026_v0, %s1620_s17 }
 0x288   : > { %1059 = vrot.lane.b32.xlu0 %v1027_v30, %s1620_s17 }
 0x289   : > { %v952_v50 = vpop.permute.xlu2 %951 }
 0x28a   : > { %v956_v1 = vpop.permute.xlu1 %955 }
 0x28b   : > { %v975_v8 = vsel %vm458_vm1, %v956_v1, %v958_v35  ;;  %v996_v9 = vadd.f32 %v956_v1, %v900_v24 }
 0x28c   : > { %v960_v49 = vpop.permute.xlu0 %959 }
 0x28d   : > { %v976_v5 = vsel %vm458_vm1, %v958_v35, %v960_v49  ;;  %v1022_v48 = vmul.f32 %v2186_v31, %v996_v9  ;;  %v513_v49 = vmul.f32 %v1848_v54, %v1924_v6 }
 0x292   : > { %v661_v27 = vpop.permute.xlu1 %660 }
 0x293   : > { %v684_v57 = vsel %vm458_vm1, %v661_v27, %v663_v43  ;;  %v704_v63 = vadd.f32 %v661_v27, %v1963_v37  ;;  %v997_v37 = vadd.f32 %v975_v8, %v2161_v7  ;;  %v878_v7 = vsel %vm361_vm0, %v856_v32, %v858_v39 }
 0x294   : > { %v705_v41 = vadd.f32 %v684_v57, %v1965_v38  ;;  %v665_v33 = vpop.permute.xlu0 %664  ;;  %v998_v38 = vadd.f32 %v976_v5, %v2140_v2  ;;  %v803_v2 = vmul.f32 %v2159_v55, %v1799_v19  ;;  %v515_v5 = vmul.f32 %v1884_v22, %v1954_v44 }
 0x295   : > { %v685_v16 = vsel %vm458_vm1, %v663_v43, %v665_v33  ;;  %728 = vrot.lane.b32.xlu1 %v704_v63, %s1619_s16  ;;  %v1023_v3 = vmul.f32 %v2191_v21, %v997_v37 }
 0x296   : > { %v706_v4 = vadd.f32 %v685_v16, %v1934_v12  ;;  %730 = vrot.lane.b32.xlu2 %v705_v41, %s1619_s16  ;;  %v802_v12 = vmul.f32 %v2159_v55, %v1794_v13  ;;  %v1024_v15 = vmul.f32 %v2145_v51, %v998_v38  ;;  %v899_v60 = vadd.f32 %v878_v7, %v803_v2 }
 0x297   : > { %v512_v38 = vmul.f32 %v1884_v22, %v1948_v47 }
 0x298   : > { %732 = vrot.lane.b32.xlu0 %v706_v4, %s1619_s16  ;;  %v898_v10 = vadd.f32 %v877_v29, %v802_v12  ;;  %v2402_v12 = vld [vmem:[#allocation8_spill] sm:$0xff] }
 0x29a   : > { %v950_v36 = vpop.permute.xlu1 %949 }
 0x29b   : > { %v973_v62 = vsel %vm458_vm1, %v950_v36, %v952_v50  ;;  %v993_v13 = vadd.f32 %v950_v36, %v897_v23 }
 0x29c   : > { %v954_v34 = vpop.permute.xlu0 %953  ;;  %v994_v14 = vadd.f32 %v973_v62, %v898_v10 }
 0x29d   : > { %1049 = vrot.lane.b32.xlu1 %v1022_v48, %s1620_s17  ;;  %v974_v26 = vsel %vm458_vm1, %v952_v50, %v954_v34  ;;  %v1019_v17 = vmul.f32 %v2186_v31, %v993_v13 }
 0x29e   : > { %1051 = vrot.lane.b32.xlu2 %v1023_v3, %s1620_s17  ;;  %v995_v32 = vadd.f32 %v974_v26, %v899_v60  ;;  %v1020_v18 = vmul.f32 %v2191_v21, %v994_v14  ;;  %v2273_v21 = vsel %vm499_vm3, %v1848_v54, %v1884_v22  ;;  %v482_v14 = vadd.f32 %v1910_v46, %v2202_v11 }
 0x29f   : > { %v514_v43 = vmul.f32 %v2273_v21, %v1951_v52  ;;  %v510_v52 = vmul.f32 %v1848_v54, %v1916_v53  ;;  %v511_v50 = vmul.f32 %v2273_v21, %v2402_v12 }
 0x2a0   : > { %1053 = vrot.lane.b32.xlu0 %v1024_v15, %s1620_s17  ;;  %v1021_v19 = vmul.f32 %v2145_v51, %v995_v32  ;;  %v749_v28 = vpop.permute.xlu2 %748 }
 0x2a2   : > { %v747_v59 = vpop.permute.xlu1 %746 }
 0x2a3   : > { %v759_v1 = vsel %vm752_vm4, %v747_v59, %v749_v28  ;;  %v479_v59 = vadd.f32 %v1908_v45, %v2173_v61  ;;  %v506_v61 = vmul.f32 %v1884_v22, %v2183_v25 }
 0x2a4   : > { %v782_v42 = vadd.f32 %v759_v1, %v513_v49 }
 0x2a5   : > { %1043 = vrot.lane.b32.xlu1 %v1019_v17, %s1620_s17  ;;  %v504_v49 = vmul.f32 %v1848_v54, %v479_v59 }
 0x2a6   : > { %1045 = vrot.lane.b32.xlu2 %v1020_v18, %s1620_s17 }
 0x2a8   : > { %1047 = vrot.lane.b32.xlu0 %v1021_v19, %s1620_s17  ;;  %s1556_s17 = scalar_lea.hbm %s2395_s5, 128 }
 0x2a9   : > { %p1558_p1 = scmp.lt.s32.totalorder %s1556_s17, %s1552_s13 }
 0x2ab   : > { %p1559_p3 = por %p1558_p1, %p1557_p0 }
 0x2ad   : > { %p1560_p4 = pnand %p1559_p3, %p1555_p13 }
 0x2b8   : > { %v751_v55 = vpop.permute.xlu0 %750  ;;  %v743_v39 = vpop.permute.xlu2 %742 }
 0x2b9   : > { %v760_v51 = vsel %vm752_vm4, %v749_v28, %v751_v55  ;;  %v784_v37 = vadd.f32 %v751_v55, %v515_v5  ;;  %v507_v55 = vmul.f32 %v1848_v54, %v482_v14  ;;  %v508_v28 = vmul.f32 %v2273_v21, %v2208_v58 }
 0x2ba   : > { %v783_v57 = vadd.f32 %v760_v51, %v514_v43  ;;  %v509_v51 = vmul.f32 %v1884_v22, %v2211_v40 }
 0x2c1   : > { %v745_v0 = vpop.permute.xlu0 %744 }
 0x2c2   : > { %v758_v36 = vsel %vm752_vm4, %v743_v39, %v745_v0  ;;  %v781_v3 = vadd.f32 %v745_v0, %v512_v38 }
 0x2c3   : > { %v780_v7 = vadd.f32 %v758_v36, %v511_v50 }
 0x2cf   : > { %v741_v30 = vpop.permute.xlu1 %740  ;;  %v1066_v35 = vpop.permute.xlu0 %1065 }
 0x2d0   : > { %v1064_v31 = vpop.permute.xlu2 %1063  ;;  %v757_v6 = vsel %vm752_vm4, %v741_v30, %v743_v39  ;;  %v1099_v23 = vadd.f32 %v1066_v35, %v784_v37 }
 0x2d1   : > { %v1075_v27 = vsel %vm1067_vm5, %v1064_v31, %v1066_v35  ;;  %v779_v20 = vadd.f32 %v757_v6, %v510_v52 }
 0x2d2   : > { %v1098_v33 = vadd.f32 %v1075_v27, %v783_v57 }
 0x2d8   : > { %v737_v16 = vpop.permute.xlu2 %736 }
 0x2e0   : > { %v1058_v29 = vpop.permute.xlu2 %1057 }
 0x2e7   : > { %v1062_v63 = vpop.permute.xlu1 %1061 }
 0x2e8   : > { %v1074_v41 = vsel %vm1067_vm5, %v1062_v63, %v1064_v31  ;;  %v505_v63 = vmul.f32 %v2273_v21, %v2180_v56  ;;  %v1106_v56 = vld [vmem:[%s2393_s3 + $0x10] sm:$0xff] }
 0x2e9   : > { %v1097_v24 = vadd.f32 %v1074_v41, %v782_v42 }
 0x2eb   : > { %v1474_v8 = vpack.i.bf16 %v1098_v33, %v1097_v24 }
 0x2ed   : > { %1475 = vrot.lane.b32.xlu1 %v1474_v8, %s1621_s29 }
 0x2ef   : > { %v735_v4 = vpop.permute.xlu1 %734 }
 0x2f0   : > { %v731_v13 = vpop.permute.xlu2 %730  ;;  %v755_v17 = vsel %vm752_vm4, %v735_v4, %v737_v16 }
 0x2f1   : > { %v776_v0 = vadd.f32 %v755_v17, %v507_v55  ;;  %v1103_v55 = vld [vmem:[%s2392_s2 + $0x18] sm:$0xff] }
 0x2f2   : > { %v739_v9 = vpop.permute.xlu0 %738 }
 0x2f3   : > { %v756_v18 = vsel %vm752_vm4, %v737_v16, %v739_v9  ;;  %v778_v43 = vadd.f32 %v739_v9, %v509_v51 }
 0x2f4   : > { %v777_v30 = vadd.f32 %v756_v18, %v508_v28  ;;  %v1102_v18 = vld [vmem:[%s2392_s2 + $0x10] sm:$0xff]  ;;  %v1101_v28 = vld [vmem:[%s2392_s2 + $0x8] sm:$0xff] }
 0x2f7   : > { %v1056_v48 = vpop.permute.xlu1 %1055 }
 0x2f8   : > { %v1072_v34 = vsel %vm1067_vm5, %v1056_v48, %v1058_v29  ;;  %v1052_v32 = vpop.permute.xlu2 %1051 }
 0x2f9   : > { %v1094_v53 = vadd.f32 %v1072_v34, %v779_v20 }
 0x2fa   : > { %v1060_v62 = vpop.permute.xlu0 %1059 }
 0x2fb   : > { %v1073_v44 = vsel %vm1067_vm5, %v1058_v29, %v1060_v62  ;;  %v1096_v2 = vadd.f32 %v1060_v62, %v781_v3  ;;  %v1479_v10 = vpack.i.bf16 %v1094_v53, %v1099_v23  ;;  %v1104_v3 = vld [vmem:[%s2393_s3] sm:$0xff]  ;;  %v1105_v23 = vld [vmem:[%s2393_s3 + $0x8] sm:$0xff]  ;;  %v1107_v53 = vld [vmem:[%s2393_s3 + $0x18] sm:$0xff] }
 0x2fc   : > { %v1095_v47 = vadd.f32 %v1073_v44, %v780_v7 }
 0x2fd   : > { %1480 = vrot.lane.b32.xlu2 %v1479_v10, %s1621_s29 }
 0x2fe   : > { %v1484_v15 = vpack.i.bf16 %v1096_v2, %v1095_v47 }
 0x300   : > { %1485 = vrot.lane.b32.xlu0 %v1484_v15, %s1621_s29  ;;  %v1046_v27 = vpop.permute.xlu2 %1045 }
 0x307   : > { %v729_v26 = vpop.permute.xlu1 %728 }
 0x308   : > { %v753_v11 = vsel %vm752_vm4, %v729_v26, %v731_v13 }
 0x309   : > { %v773_v45 = vadd.f32 %v753_v11, %v504_v49 }
 0x30a   : > { %v733_v60 = vpop.permute.xlu0 %732 }
 0x30b   : > { %v754_v42 = vsel %vm752_vm4, %v731_v13, %v733_v60  ;;  %v775_v40 = vadd.f32 %v733_v60, %v506_v61 }
 0x30c   : > { %v774_v24 = vadd.f32 %v754_v42, %v505_v63 }
 0x30f   : > { %v1050_v19 = vpop.permute.xlu1 %1049 }
 0x310   : > { %v1070_v39 = vsel %vm1067_vm5, %v1050_v19, %v1052_v32  ;;  %v1100_v19 = vld [vmem:[%s2392_s2] sm:$0xff] }
 0x311   : > { %v1091_v31 = vadd.f32 %v1070_v39, %v776_v0 }
 0x312   : > { %v1054_v35 = vpop.permute.xlu0 %1053 }
 0x313   : > { %v1071_v46 = vsel %vm1067_vm5, %v1052_v32, %v1054_v35  ;;  %v1093_v33 = vadd.f32 %v1054_v35, %v778_v43 }
 0x314   : > { %v1092_v1 = vadd.f32 %v1071_v46, %v777_v30 }
 0x316   : > { %v1489_v58 = vpack.i.bf16 %v1092_v1, %v1091_v31 }
 0x317   : > { %v1044_v57 = vpop.permute.xlu1 %1043 }
 0x318   : > { %v1068_v41 = vsel %vm1067_vm5, %v1044_v57, %v1046_v27  ;;  %1490 = vrot.lane.b32.xlu1 %v1489_v58, %s1621_s29 }
 0x319   : > { %v1088_v54 = vadd.f32 %v1068_v41, %v773_v45 }
 0x31a   : > { %v1048_v8 = vpop.permute.xlu0 %1047 }
 0x31b   : > { %v1069_v16 = vsel %vm1067_vm5, %v1046_v27, %v1048_v8  ;;  %v1090_v4 = vadd.f32 %v1048_v8, %v775_v40  ;;  %v1494_v9 = vpack.i.bf16 %v1088_v54, %v1093_v33 }
 0x31c   : > { %v1089_v22 = vadd.f32 %v1069_v16, %v774_v24 }
 0x31d   : > { %1495 = vrot.lane.b32.xlu2 %v1494_v9, %s1621_s29 }
 0x31e   : > { %v1499_v25 = vpack.i.bf16 %v1090_v4, %v1089_v22 }
 0x320   : > { %1500 = vrot.lane.b32.xlu0 %v1499_v25, %s1621_s29  ;;  %1110 = vperm.xlu1 %1504, %v1104_v3  }
 0x325   : > { %1115 = vperm.xlu2 %1505, %v1105_v23  }
 0x328   : > { %1120 = vperm.xlu0 %1473, %v1106_v56   ;;  %1125 = vperm.xlu1 %1504, %v1107_v53  }
 0x357   : > { %v1481_v21 = vpop.permute.xlu2 %1480 }
 0x358   : > { %v1482_v52 = vunpack.i.l.bf16 %v1481_v21  ;;  %v1483_v29 = vunpack.i.h.bf16 %v1481_v21 }
 0x35f   : > { %v1476_v6 = vpop.permute.xlu1 %1475 }
 0x360   : > { %v1478_v5 = vunpack.i.h.bf16 %v1476_v6  ;;  %v1477_v37 = vunpack.i.l.bf16 %v1476_v6 }
 0x362   : > { %v1171_v38 = vsel %vm1164_vm6, %v1477_v37, %v1478_v5  ;;  %v1172_v36 = vsel %vm1164_vm6, %v1478_v5, %v1482_v52 }
 0x363   : > { %1206 = vmatpush.msra.mxu0 %v1171_v38  ;;  %1374 = vmatpush.msra.mxu2 %v1171_v38 }
 0x364   : > { %1235 = vmatpush.msra.mxu1 %v1172_v36  ;;  %1378 = vmatpush.msra.mxu3 %v1172_v36 }
 0x372   : > { %v1486_v20 = vpop.permute.xlu0 %1485 }
 0x373   : > { %v1488_v48 = vunpack.i.h.bf16 %v1486_v20  ;;  %v1487_v12 = vunpack.i.l.bf16 %v1486_v20 }
 0x375   : > { %v1169_v50 = vsel %vm1164_vm6, %v1483_v29, %v1487_v12  ;;  %v1170_v34 = vsel %vm1164_vm6, %v1487_v12, %v1488_v48 }
 0x376   : > { %1207 = vmatpush.msra.mxu0 %v1169_v50  ;;  %1375 = vmatpush.msra.mxu2 %v1169_v50 }
 0x377   : > { %1236 = vmatpush.msra.mxu1 %v1170_v34  ;;  %1379 = vmatpush.msra.mxu3 %v1170_v34  ;;  %v1496_v7 = vpop.permute.xlu2 %1495 }
 0x378   : > { %v1497_v44 = vunpack.i.l.bf16 %v1496_v7  ;;  %v1498_v26 = vunpack.i.h.bf16 %v1496_v7 }
 0x37f   : > { %v1116_v49 = vpop.permute.xlu2 %1115 }
 0x38a   : > { %v1491_v62 = vpop.permute.xlu1 %1490 }
 0x38b   : > { %v1493_v2 = vunpack.i.h.bf16 %v1491_v62  ;;  %v1492_v10 = vunpack.i.l.bf16 %v1491_v62 }
 0x38d   : > { %v1167_v47 = vsel %vm1164_vm6, %v1492_v10, %v1493_v2  ;;  %v1168_v15 = vsel %vm1164_vm6, %v1493_v2, %v1497_v44 }
 0x38e   : > { %1208 = vmatpush.msra.mxu0 %v1167_v47  ;;  %1376 = vmatpush.msra.mxu2 %v1167_v47 }
 0x38f   : > { %1237 = vmatpush.msra.mxu1 %v1168_v15  ;;  %1380 = vmatpush.msra.mxu3 %v1168_v15 }
 0x392   : > { %v1501_v13 = vpop.permute.xlu0 %1500  ;;  %v1111_v59 = vpop.permute.xlu1 %1110 }
 0x393   : > { %v1503_v60 = vunpack.i.h.bf16 %v1501_v13  ;;  %v1502_v14 = vunpack.i.l.bf16 %v1501_v13 }
 0x395   : > { %v1165_v32 = vsel %vm1164_vm6, %v1498_v26, %v1502_v14  ;;  %v1166_v17 = vsel %vm1164_vm6, %v1502_v14, %v1503_v60 }
 0x396   : > { %1209 = vmatpush.msra.mxu0 %v1165_v32  ;;  %1377 = vmatpush.msra.mxu2 %v1165_v32 }
 0x397   : > { %1238 = vmatpush.msra.mxu1 %v1166_v17  ;;  %1381 = vmatpush.msra.mxu3 %v1166_v17 }
 0x398   : > { %1361 = vmatmul.msk.f32.vlgmr.msra.gmra.mxu2 %vm1181_vm7, %v1102_v18  ;;  %1365 = vmatmul.msk.f32.vlgmr.msra.gmra.mxu3 %vm1181_vm7, %v1102_v18 }
 0x399   : > { %1359 = vmatmul.msk.f32.vlgmr.msra.gmra.mxu0 %vm1181_vm7, %v1100_v19  ;;  %1363 = vmatmul.msk.f32.vlgmr.msra.gmra.mxu1 %vm1181_vm7, %v1100_v19 }
 0x39a   : > { %v1121_v46 = vpop.permute.xlu0 %1120  ;;  %v1126_v61 = vpop.permute.xlu1 %1125 }
 0x3a0   : > { %1362 = vmatmul.msk.f32.gmra.mxu2 %vm1181_vm7, %v1103_v55  ;;  %1366 = vmatmul.msk.f32.gmra.mxu3 %vm1181_vm7, %v1103_v55 }
 0x3a1   : > { %1360 = vmatmul.msk.f32.gmra.mxu0 %vm1181_vm7, %v1101_v28  ;;  %1364 = vmatmul.msk.f32.gmra.mxu1 %vm1181_vm7, %v1101_v28 }
 0x416   : > { %v1211_v39 = vpop.f32.mrf.mxu0  ;;  %v1240_v0 = vpop.f32.mrf.mxu1 }
 0x417   : > { %v1212_v30 = vadd.f32 %v1211_v39, %v1111_v59  ;;  %v1241_v35 = vadd.f32 %v1240_v0, %v1111_v59 }
 0x419   : > { %1252 = vst [vmem:[%s244_s28] sm:$0xff] %v1212_v30 }
 0x41a   : > { %1253 = vst [vmem:[%s244_s28 + $0x8] sm:$0xff] %v1241_v35 }
 0x41b   : > { %v1217_v11 = vpop.f32.mrf.mxu2  ;;  %v1246_v31 = vpop.f32.mrf.mxu3 }
 0x41c   : > { %v1218_v1 = vadd.f32 %v1217_v11, %v1121_v46  ;;  %v1247_v51 = vadd.f32 %v1246_v31, %v1121_v46 }
 0x41e   : > { %1256 = vst [vmem:[%s244_s28 + $0x20] sm:$0xff] %v1218_v1  ;;  %v1214_v58 = vpop.f32.mrf.mxu0  ;;  %v1243_v43 = vpop.f32.mrf.mxu1 }
 0x41f   : > { %1257 = vst [vmem:[%s244_s28 + $0x28] sm:$0xff] %v1247_v51  ;;  %v1215_v27 = vadd.f32 %v1214_v58, %v1116_v49  ;;  %v1244_v45 = vadd.f32 %v1243_v43, %v1116_v49 }
 0x421   : > { %1254 = vst [vmem:[%s244_s28 + $0x10] sm:$0xff] %v1215_v27 }
 0x422   : > { %1255 = vst [vmem:[%s244_s28 + $0x18] sm:$0xff] %v1244_v45 }
 0x423   : > { %v1220_v42 = vpop.f32.mrf.mxu2  ;;  %v1249_v57 = vpop.f32.mrf.mxu3 }
 0x424   : > { %v1221_v63 = vadd.f32 %v1220_v42, %v1126_v61  ;;  %v1250_v41 = vadd.f32 %v1249_v57, %v1126_v61 }
 0x426   : > { %1258 = vst [vmem:[%s244_s28 + $0x30] sm:$0xff] %v1221_v63 }
 0x427   : > { %1259 = vst [vmem:[%s244_s28 + $0x38] sm:$0xff] %v1250_v41 }
 0x428   : > { %1563 = shalt.err (!%p1560_p4)
}
 0x429   : > { %s1622_s12 = smov 256   ;;  %s1623_s8 = smov 16  }
 0x42a   : > { %1384 = dma.vmem_to_hbm [thread:$0]  (%p1704_p11), %s1274_s14, 1024, %s1276_s23, %s1261_s22, %s1622_s12, %s1622_s12, %s1623_s8  }
 0x42b PF: > { %s1290_s28 = sand.u32 1, %s1590_s18   ;;  %p2403_p7 = scmp.ge.s32.totalorder %s1602_s21, 2 }
 0x42c   : > { %s1291_s9 = scalar_lea.sflag [#allocation4], %s1290_s28 }
 0x42d   : > { %p1391_p5 = pnand %p2403_p7, %p1708_p12 }
 0x42f   : > { %p1392_p8 = pneg %p1391_p5 }
 0x431   : > { %1585 = dma.done.wait (%p1392_p8), %s1291_s9, 1024  }
 0x432   : > { %1587 = vsyncadd (%p1392_p8), %s1291_s9, 4294966272  ;;  %p18_p10 = scmp.ge.s32.totalorder %s1679_s24, 4   ;;  %s2404_s18 = smov %s1594_s19 }
 0x433   : > { %s2405_s19 = smov %s1598_s20  ;;  %s2406_s20 = smov %s1691_s27 }
 0x434   : > { %s2407_s21 = smov %s1679_s24  ;;  %20 = sbr.rel (!%p18_p10) target bundleno = 5 (0x5), region = 86 }
 0x439   :  { %1297 = vsyncpa [#allocation3], 1 }
 0x43a   :  { %1299 = vsyncpa [#allocation3 + $0x1], 1 }
 0x43b   :  { %1300 = vsyncpa [#allocation4], 1 }
 0x43c   :  { %1302 = vsyncpa [#allocation4 + $0x1], 1 }

</bundles_post_ra>
